<compile_context>
chip_gen: v7x
topology: tpu7x:2x2x1
jax: 0.10.0
libtpu: 0.0.40
codegen_flags: <defaults>
</compile_context>

<pallas_src>
import jax
import jax.numpy as jnp
from jax.experimental import pallas as pl
from jax.experimental.pallas import tpu as pltpu

_LANES = 128
_SUBLANES = 8
_QUANT = _LANES * _SUBLANES  # 1024: keeps every (8, tb/8) block fully tiled


def _round_up(x, m):
    return (x + m - 1) // m * m


def _make_kernel(in_features, lanes_per_row, batch_size, tile_lanes, needs_mask):
    def kernel(x_ref, y_ref, w_ref, b_ref, pred_ref, lsum_ref):
        # x_ref   : (IN, 8, TBL) VMEM   (feature, sublane, lane)
        # y_ref   : (8, TBL)     VMEM
        # w_ref   : (IN,)        SMEM   (review #6: weights as scalars)
        # b_ref   : (1,)         SMEM
        # pred_ref: (8, TBL)     VMEM   lane-dense, unmasked stores
        # lsum_ref: (1, 128)     VMEM   per-tile loss partial (broadcast)

        # Linear(10, 1): 10 scalar*vector multiply-adds on full (8,128) vregs.
        z = x_ref[0] * w_ref[0]
        for k in range(1, in_features):        # K=10 -> unrolled VPU chain
            z = z + x_ref[k] * w_ref[k]
        z = z + b_ref[0]
        pred_ref[...] = z.astype(pred_ref.dtype)

        # Numerically stable BCEWithLogits (matches PyTorch):
        #   l = max(z, 0) - z*y + log1p(exp(-|z|))
        y = y_ref[...]
        per = jnp.maximum(z, 0.0) - z * y + jnp.log1p(jnp.exp(-jnp.abs(z)))

        if needs_mask:
            # Select-based masking of padded batch elements (no arithmetic
            # masking, so any garbage can never propagate NaN into the sum).
            i = pl.program_id(0)
            row = jax.lax.broadcasted_iota(jnp.int32, per.shape, 0)
            col = jax.lax.broadcasted_iota(jnp.int32, per.shape, 1)
            gidx = row * lanes_per_row + i * tile_lanes + col
            per = jnp.where(gidx < batch_size, per, 0.0)

        # Per-tile partial sum broadcast over a lane-dense (1,128) slot; the
        # wrapper reads lane 0 of each tile and finishes the mean.
        lsum_ref[...] = jnp.broadcast_to(jnp.sum(per), (1, _LANES)).astype(
            lsum_ref.dtype)

    return kernel


def test_module_forward(float_features, label, weight, bias, *,
                        tile_b=65536, feature_major=False):
    """TestModule.forward.

    float_features: (B, 10) f32  (or (10, B) if feature_major=True -- the
                     review's preferred 'producer emits feature-major' path,
                     which needs no transpose at all)
    label:  (B, 1) f32
    weight: (1, 10) f32  (PyTorch nn.Linear layout)
    bias:   (1,)   f32
    Returns (loss scalar, pred (B, 1)).
    """
    if feature_major:
        in_f, B = float_features.shape
    else:
        B, in_f = float_features.shape
    out_f, w_in = weight.shape
    assert out_f == 1 and w_in == in_f, "TestModule uses nn.Linear(10, 1)"
    assert label.shape[0] == B

    # ---- tile selection (reviews #2, #5) ---------------------------------
    tile_b = max(_QUANT, _round_up(int(tile_b), _QUANT))
    b_quant = _round_up(B, _QUANT)
    num_tiles = pl.cdiv(b_quant, tile_b)
    if b_quant >= 2 * _QUANT:
        num_tiles = max(num_tiles, 2)      # keep both v7x TensorCores busy
    tb = _round_up(pl.cdiv(b_quant, num_tiles), _QUANT)   # <= tile_b
    B_pad = num_tiles * tb                 # every tile fully in-bounds
    tbl = tb // _SUBLANES                  # lanes per tile (multiple of 128)
    q = B_pad // _SUBLANES                 # lanes per sublane-row
    needs_mask = (B_pad != B)

    # ---- layout plumbing ---------------------------------------------------
    x = float_features.astype(jnp.float32)
    y = label.astype(jnp.float32).reshape(B)
    pad = B_pad - B
    if feature_major:
        if pad:
            x = jnp.pad(x, ((0, 0), (0, pad)))
        x_t = x.reshape(in_f, _SUBLANES, q)            # free (contiguous)
    else:
        if pad:
            x = jnp.pad(x, ((0, pad), (0, 0)))
        # Single fused pad+transpose+reshape copy pass in XLA (see header
        # comment for why the transpose is not pushed into the kernel).
        x_t = x.T.reshape(in_f, _SUBLANES, q)
    if pad:
        y = jnp.pad(y, (0, pad))
    y_t = y.reshape(_SUBLANES, q)                      # free (contiguous)
    w_s = weight.astype(jnp.float32).reshape(in_f)     # (10,) -> SMEM
    b_s = bias.astype(jnp.float32).reshape(1)          # (1,)  -> SMEM

    # ---- explicit VMEM budget (review #3) ---------------------------------
    # Dense blocks: x = 4*in_f*tb, label = pred = 4*tb bytes; double-buffered.
    blk_bytes = 4 * (in_f * tb + tb + tb)
    vmem_need = 2 * blk_bytes + 2 * (_LANES * 4)
    vmem_limit = int(min(max(vmem_need + (16 << 20), 32 << 20), 48 << 20))

    kernel = _make_kernel(in_f, q, B, tbl, needs_mask)

    pred_t, loss_part = pl.pallas_call(
        kernel,
        grid=(num_tiles,),
        in_specs=[
            pl.BlockSpec((in_f, _SUBLANES, tbl), lambda i: (0, 0, i)),   # x
            pl.BlockSpec((_SUBLANES, tbl), lambda i: (0, i)),            # label
            pl.BlockSpec(memory_space=pltpu.MemorySpace.SMEM),           # weight
            pl.BlockSpec(memory_space=pltpu.MemorySpace.SMEM),           # bias
        ],
        out_specs=(
            pl.BlockSpec((_SUBLANES, tbl), lambda i: (0, i)),            # pred
            pl.BlockSpec((1, _LANES), lambda i: (0, i)),                 # loss part
        ),
        out_shape=(
            jax.ShapeDtypeStruct((_SUBLANES, q), jnp.float32),
            jax.ShapeDtypeStruct((1, _LANES * num_tiles), jnp.float32),
        ),
        compiler_params=pltpu.CompilerParams(
            dimension_semantics=("parallel",),
            vmem_limit_bytes=vmem_limit),
    )(x_t, y_t, w_s, b_s)

    # Finish in the wrapper (keeps the grid fully parallel across TCs).
    pred = pred_t.reshape(B_pad)[:B].reshape(B, out_f)
    loss = jnp.sum(loss_part.reshape(num_tiles, _LANES)[:, 0]) / jnp.float32(B)
    return loss, pred


if __name__ == "__main__":
    key = jax.random.PRNGKey(0)
    k_x, k_y, k_w, k_b = jax.random.split(key, 4)

    B, IN, OUT = 8, 10, 1

    # Inputs (ModelInputSimple)
    float_features = jax.random.normal(k_x, (B, IN), dtype=jnp.float32)
    label = jax.random.bernoulli(k_y, 0.5, (B, OUT)).astype(jnp.float32)

    # Deterministic Linear(10, 1) params (PyTorch-style uniform init)
    bound = 1.0 / jnp.sqrt(jnp.float32(IN))
    weight = jax.random.uniform(k_w, (OUT, IN), minval=-bound, maxval=bound,
                                dtype=jnp.float32)
    bias = jax.random.uniform(k_b, (OUT,), minval=-bound, maxval=bound,
                              dtype=jnp.float32)

    def ref_fwd(x, y, w, b):
        z = x @ w.T + b
        per = (jnp.maximum(z, 0.0) - z * y + jnp.log1p(jnp.exp(-jnp.abs(z))))
        return jnp.mean(per), z

    # 1) Module-sized check (B=8): single tile, padded-tail mask path, jitted
    #    so the pad+transpose fuses with the kernel launch.
    fwd = jax.jit(test_module_forward)
    loss, pred = fwd(float_features, label, weight, bias)
    jax.block_until_ready((loss, pred))
    loss_r, pred_r = ref_fwd(float_features, label, weight, bias)
    assert pred.shape == (B, OUT)
    assert jnp.allclose(pred, pred_r, atol=1e-5, rtol=1e-5)
    assert jnp.allclose(loss, loss_r, atol=1e-5, rtol=1e-5)

    # 2) Multi-tile + masked-tail path (grid > 1, B % tile != 0).
    B2 = 2500
    x2 = jax.random.normal(k_x, (B2, IN), dtype=jnp.float32)
    y2 = jax.random.bernoulli(k_y, 0.5, (B2, OUT)).astype(jnp.float32)
    loss2, pred2 = test_module_forward(x2, y2, weight, bias, tile_b=1024)
    jax.block_until_ready((loss2, pred2))
    loss2_r, pred2_r = ref_fwd(x2, y2, weight, bias)
    assert jnp.allclose(pred2, pred2_r, atol=1e-5, rtol=1e-5)
    assert jnp.allclose(loss2, loss2_r, atol=1e-4, rtol=1e-4)

    # 3) Feature-major producer path (review fix (a): no transpose anywhere).
    loss3, pred3 = test_module_forward(float_features.T, label, weight, bias,
                                       feature_major=True)
    jax.block_until_ready((loss3, pred3))
    assert jnp.allclose(pred3, pred_r, atol=1e-5, rtol=1e-5)
    assert jnp.allclose(loss3, loss_r, atol=1e-5, rtol=1e-5)

    print("KERNEL_OK")
</pallas_src>

<mosaic_0001>
module attributes {stable_mosaic.version = 11 : i64} {
  func.func @kernel(%arg0: i32, %arg1: memref<10x8x128xf32, #tpu.memory_space<vmem>>, %arg2: memref<8x128xf32, #tpu.memory_space<vmem>>, %arg3: memref<10xf32, #tpu.memory_space<smem>>, %arg4: memref<1xf32, #tpu.memory_space<smem>>, %arg5: memref<8x128xf32, #tpu.memory_space<vmem>>, %arg6: memref<1x128xf32, #tpu.memory_space<vmem>>) attributes {dimension_semantics = [#tpu.dimension_semantics<parallel>], iteration_bounds = array<i64: 1>, scalar_prefetch = 0 : i64, scratch_operands = 0 : i64, tpu.core_type = #tpu.core_type<tc>, window_params = [{transform_indices = @transform_0, window_bounds = array<i64: 10, 8, 128>}, {transform_indices = @transform_1, window_bounds = array<i64: 8, 128>}, {transform_indices = @transform_2, window_bounds = array<i64: 10>}, {transform_indices = @transform_3, window_bounds = array<i64: 1>}, {transform_indices = @transform_4, window_bounds = array<i64: 8, 128>}, {transform_indices = @transform_5, window_bounds = array<i64: 1, 128>}]} {
    %c0 = arith.constant 0 : index
    %c0_0 = arith.constant 0 : index
    %c0_1 = arith.constant 0 : index
    %0 = vector.load %arg1[%c0, %c0_0, %c0_1] : memref<10x8x128xf32, #tpu.memory_space<vmem>>, vector<1x8x128xf32>
    %1 = vector.shape_cast %0 : vector<1x8x128xf32> to vector<8x128xf32>
    %c0_2 = arith.constant 0 : index
    %2 = memref.load %arg3[%c0_2] : memref<10xf32, #tpu.memory_space<smem>>
    %3 = vector.broadcast %2 : f32 to vector<8x128xf32>
    %4 = arith.mulf %1, %3 : vector<8x128xf32>
    %c1 = arith.constant 1 : index
    %c0_3 = arith.constant 0 : index
    %c0_4 = arith.constant 0 : index
    %5 = vector.load %arg1[%c1, %c0_3, %c0_4] : memref<10x8x128xf32, #tpu.memory_space<vmem>>, vector<1x8x128xf32>
    %6 = vector.shape_cast %5 : vector<1x8x128xf32> to vector<8x128xf32>
    %c1_5 = arith.constant 1 : index
    %7 = memref.load %arg3[%c1_5] : memref<10xf32, #tpu.memory_space<smem>>
    %8 = vector.broadcast %7 : f32 to vector<8x128xf32>
    %9 = arith.mulf %6, %8 : vector<8x128xf32>
    %10 = arith.addf %4, %9 : vector<8x128xf32>
    %c2 = arith.constant 2 : index
    %c0_6 = arith.constant 0 : index
    %c0_7 = arith.constant 0 : index
    %11 = vector.load %arg1[%c2, %c0_6, %c0_7] : memref<10x8x128xf32, #tpu.memory_space<vmem>>, vector<1x8x128xf32>
    %12 = vector.shape_cast %11 : vector<1x8x128xf32> to vector<8x128xf32>
    %c2_8 = arith.constant 2 : index
    %13 = memref.load %arg3[%c2_8] : memref<10xf32, #tpu.memory_space<smem>>
    %14 = vector.broadcast %13 : f32 to vector<8x128xf32>
    %15 = arith.mulf %12, %14 : vector<8x128xf32>
    %16 = arith.addf %10, %15 : vector<8x128xf32>
    %c3 = arith.constant 3 : index
    %c0_9 = arith.constant 0 : index
    %c0_10 = arith.constant 0 : index
    %17 = vector.load %arg1[%c3, %c0_9, %c0_10] : memref<10x8x128xf32, #tpu.memory_space<vmem>>, vector<1x8x128xf32>
    %18 = vector.shape_cast %17 : vector<1x8x128xf32> to vector<8x128xf32>
    %c3_11 = arith.constant 3 : index
    %19 = memref.load %arg3[%c3_11] : memref<10xf32, #tpu.memory_space<smem>>
    %20 = vector.broadcast %19 : f32 to vector<8x128xf32>
    %21 = arith.mulf %18, %20 : vector<8x128xf32>
    %22 = arith.addf %16, %21 : vector<8x128xf32>
    %c4 = arith.constant 4 : index
    %c0_12 = arith.constant 0 : index
    %c0_13 = arith.constant 0 : index
    %23 = vector.load %arg1[%c4, %c0_12, %c0_13] : memref<10x8x128xf32, #tpu.memory_space<vmem>>, vector<1x8x128xf32>
    %24 = vector.shape_cast %23 : vector<1x8x128xf32> to vector<8x128xf32>
    %c4_14 = arith.constant 4 : index
    %25 = memref.load %arg3[%c4_14] : memref<10xf32, #tpu.memory_space<smem>>
    %26 = vector.broadcast %25 : f32 to vector<8x128xf32>
    %27 = arith.mulf %24, %26 : vector<8x128xf32>
    %28 = arith.addf %22, %27 : vector<8x128xf32>
    %c5 = arith.constant 5 : index
    %c0_15 = arith.constant 0 : index
    %c0_16 = arith.constant 0 : index
    %29 = vector.load %arg1[%c5, %c0_15, %c0_16] : memref<10x8x128xf32, #tpu.memory_space<vmem>>, vector<1x8x128xf32>
    %30 = vector.shape_cast %29 : vector<1x8x128xf32> to vector<8x128xf32>
    %c5_17 = arith.constant 5 : index
    %31 = memref.load %arg3[%c5_17] : memref<10xf32, #tpu.memory_space<smem>>
    %32 = vector.broadcast %31 : f32 to vector<8x128xf32>
    %33 = arith.mulf %30, %32 : vector<8x128xf32>
    %34 = arith.addf %28, %33 : vector<8x128xf32>
    %c6 = arith.constant 6 : index
    %c0_18 = arith.constant 0 : index
    %c0_19 = arith.constant 0 : index
    %35 = vector.load %arg1[%c6, %c0_18, %c0_19] : memref<10x8x128xf32, #tpu.memory_space<vmem>>, vector<1x8x128xf32>
    %36 = vector.shape_cast %35 : vector<1x8x128xf32> to vector<8x128xf32>
    %c6_20 = arith.constant 6 : index
    %37 = memref.load %arg3[%c6_20] : memref<10xf32, #tpu.memory_space<smem>>
    %38 = vector.broadcast %37 : f32 to vector<8x128xf32>
    %39 = arith.mulf %36, %38 : vector<8x128xf32>
    %40 = arith.addf %34, %39 : vector<8x128xf32>
    %c7 = arith.constant 7 : index
    %c0_21 = arith.constant 0 : index
    %c0_22 = arith.constant 0 : index
    %41 = vector.load %arg1[%c7, %c0_21, %c0_22] : memref<10x8x128xf32, #tpu.memory_space<vmem>>, vector<1x8x128xf32>
    %42 = vector.shape_cast %41 : vector<1x8x128xf32> to vector<8x128xf32>
    %c7_23 = arith.constant 7 : index
    %43 = memref.load %arg3[%c7_23] : memref<10xf32, #tpu.memory_space<smem>>
    %44 = vector.broadcast %43 : f32 to vector<8x128xf32>
    %45 = arith.mulf %42, %44 : vector<8x128xf32>
    %46 = arith.addf %40, %45 : vector<8x128xf32>
    %c8 = arith.constant 8 : index
    %c0_24 = arith.constant 0 : index
    %c0_25 = arith.constant 0 : index
    %47 = vector.load %arg1[%c8, %c0_24, %c0_25] : memref<10x8x128xf32, #tpu.memory_space<vmem>>, vector<1x8x128xf32>
    %48 = vector.shape_cast %47 : vector<1x8x128xf32> to vector<8x128xf32>
    %c8_26 = arith.constant 8 : index
    %49 = memref.load %arg3[%c8_26] : memref<10xf32, #tpu.memory_space<smem>>
    %50 = vector.broadcast %49 : f32 to vector<8x128xf32>
    %51 = arith.mulf %48, %50 : vector<8x128xf32>
    %52 = arith.addf %46, %51 : vector<8x128xf32>
    %c9 = arith.constant 9 : index
    %c0_27 = arith.constant 0 : index
    %c0_28 = arith.constant 0 : index
    %53 = vector.load %arg1[%c9, %c0_27, %c0_28] : memref<10x8x128xf32, #tpu.memory_space<vmem>>, vector<1x8x128xf32>
    %54 = vector.shape_cast %53 : vector<1x8x128xf32> to vector<8x128xf32>
    %c9_29 = arith.constant 9 : index
    %55 = memref.load %arg3[%c9_29] : memref<10xf32, #tpu.memory_space<smem>>
    %56 = vector.broadcast %55 : f32 to vector<8x128xf32>
    %57 = arith.mulf %54, %56 : vector<8x128xf32>
    %58 = arith.addf %52, %57 : vector<8x128xf32>
    %c0_30 = arith.constant 0 : index
    %59 = memref.load %arg4[%c0_30] : memref<1xf32, #tpu.memory_space<smem>>
    %60 = vector.broadcast %59 : f32 to vector<8x128xf32>
    %61 = arith.addf %58, %60 : vector<8x128xf32>
    %c0_31 = arith.constant 0 : index
    %c0_32 = arith.constant 0 : index
    %62 = vector.load %arg5[%c0_31, %c0_32] : memref<8x128xf32, #tpu.memory_space<vmem>>, vector<8x128xf32>
    tpu.vector_store %arg5[%c0_31, %c0_32], %61 {strides = array<i32>} : memref<8x128xf32, #tpu.memory_space<vmem>>, vector<8x128xf32>,
    %c0_33 = arith.constant 0 : index
    %c0_34 = arith.constant 0 : index
    %63 = vector.load %arg2[%c0_33, %c0_34] : memref<8x128xf32, #tpu.memory_space<vmem>>, vector<8x128xf32>
    %cst = arith.constant 0.000000e+00 : f32
    %64 = vector.broadcast %cst : f32 to vector<8x128xf32>
    %65 = arith.maximumf %61, %64 : vector<8x128xf32>
    %66 = arith.mulf %61, %63 : vector<8x128xf32>
    %67 = arith.subf %65, %66 : vector<8x128xf32>
    %68 = math.absf %61 : vector<8x128xf32>
    %cst_35 = arith.constant 0.000000e+00 : f32
    %69 = vector.broadcast %cst_35 : f32 to vector<8x128xf32>
    %70 = arith.subf %69, %68 : vector<8x128xf32>
    %71 = math.exp %70 : vector<8x128xf32>
    %72 = math.log1p %71 : vector<8x128xf32>
    %73 = arith.addf %67, %72 : vector<8x128xf32>
    %74 = tpu.iota {dimensions = array<i32: 0>} : vector<8x128xi32>
    %75 = tpu.iota {dimensions = array<i32: 1>} : vector<8x128xi32>
    %c128_i32 = arith.constant 128 : i32
    %76 = vector.broadcast %c128_i32 : i32 to vector<8x128xi32>
    %77 = arith.muli %74, %76 : vector<8x128xi32>
    %c128_i32_36 = arith.constant 128 : i32
    %78 = arith.muli %arg0, %c128_i32_36 : i32
    %79 = vector.broadcast %78 : i32 to vector<8x128xi32>
    %80 = arith.addi %77, %79 : vector<8x128xi32>
    %81 = arith.addi %80, %75 : vector<8x128xi32>
    %c8_i32 = arith.constant 8 : i32
    %82 = vector.broadcast %c8_i32 : i32 to vector<8x128xi32>
    %83 = arith.cmpi slt, %81, %82 : vector<8x128xi32>
    %cst_37 = arith.constant 0.000000e+00 : f32
    %84 = vector.broadcast %cst_37 : f32 to vector<8x128xf32>
    %85 = arith.select %83, %73, %84 : vector<8x128xi1>, vector<8x128xf32>
    %86 = vector.shape_cast %85 : vector<8x128xf32> to vector<1x8x128xf32>
    %cst_38 = arith.constant dense<0.000000e+00> : vector<1xf32>
    %87 = vector.multi_reduction <add>, %86, %cst_38 [1, 2] : vector<1x8x128xf32> to vector<1xf32>
    %88 = vector.shape_cast %87 : vector<1xf32> to vector<1x1x1xf32>
    %89 = vector.extract %88[0, 0, 0] : f32 from vector<1x1x1xf32>
    %90 = vector.broadcast %89 : f32 to vector<1x128xf32>
    %c0_39 = arith.constant 0 : index
    %c0_40 = arith.constant 0 : index
    %91 = vector.load %arg6[%c0_39, %c0_40] : memref<1x128xf32, #tpu.memory_space<vmem>>, vector<1x128xf32>
    tpu.vector_store %arg6[%c0_39, %c0_40], %90 {strides = array<i32>} : memref<1x128xf32, #tpu.memory_space<vmem>>, vector<1x128xf32>,
    return
  }
  func.func @transform_0(%arg0: i32) -> (i32, i32, i32) {
    %c0_i32 = arith.constant 0 : i32
    %c0_i32_0 = arith.constant 0 : i32
    %c0_i32_1 = arith.constant 0 : i32
    return %c0_i32, %c0_i32_0, %arg0 : i32, i32, i32
  }
  func.func @transform_1(%arg0: i32) -> (i32, i32) {
    %c0_i32 = arith.constant 0 : i32
    %c0_i32_0 = arith.constant 0 : i32
    return %c0_i32, %arg0 : i32, i32
  }
  func.func @transform_2(%arg0: i32) -> i32 {
    %c0_i32 = arith.constant 0 : i32
    %c0_i32_0 = arith.constant 0 : i32
    return %c0_i32 : i32
  }
  func.func @transform_3(%arg0: i32) -> i32 {
    %c0_i32 = arith.constant 0 : i32
    %c0_i32_0 = arith.constant 0 : i32
    return %c0_i32 : i32
  }
  func.func @transform_4(%arg0: i32) -> (i32, i32) {
    %c0_i32 = arith.constant 0 : i32
    %c0_i32_0 = arith.constant 0 : i32
    return %c0_i32, %arg0 : i32, i32
  }
  func.func @transform_5(%arg0: i32) -> (i32, i32) {
    %c0_i32 = arith.constant 0 : i32
    %c0_i32_0 = arith.constant 0 : i32
    return %c0_i32, %arg0 : i32, i32
  }
}

</mosaic_0001>

<bundles_post_ra>
// kernel: test_module_forward.1
= control target key start
LH: loop header
LB: loop body
LE: loop exit
PB: predicated region body
PF: predicated region fallthrough
CT: control target
= control target key end

     0   :  { %12 = vsyncpa [#allocation4], 0  ;;  %s259_s0 = inlined_call_operand.vmem [shape: f32[10,8,128], index: 0, kind: input, shape index: {}]   ;;  %s260_s1 = inlined_call_operand.vmem [shape: f32[8,128], index: 1, kind: input, shape index: {}]   ;;  %s261_s2 = inlined_call_operand.vmem [shape: f32[10], index: 2, kind: input, shape index: {}]   ;;  %s262_s3 = inlined_call_operand.<no memory space> [shape: f32[1], index: 3, kind: input, shape index: {}]   ;;  %s263_s4 = inlined_call_operand.vmem [shape: f32[8,128], index: 4, kind: output, shape index: {0}]   ;;  %s264_s5 = inlined_call_operand.vmem [shape: f32[1,128], index: 5, kind: output, shape index: {1}]  }
   0x1   :  { %s23_s20 = sshll.u32 %s261_s2, 4  ;;  %s24_s20 = int_to_ptr.vmem [resolvable:$true] %s23_s20 }
   0x2   :  { %s169_s21 = scalar_lea.vmem %s24_s20, 16  ;;  %p174_p1 = scmp.lt.s32.totalorder %s24_s20, %s24_s20 }
   0x3   :  { %p170_p0 = scmp.ne.s32.totalorder %s24_s20, %s169_s21  ;;  %p175_p2 = scmp.lt.s32.totalorder %s169_s21, %s169_s21 }
   0x5   :  { %p176_p3 = por %p175_p2, %p174_p1 }
   0x7   :  { %p177_p4 = pnand %p176_p3, %p170_p0 }
   0x9   :  { %180 = shalt.err (!%p177_p4)
}
   0xa   :  { %s183_s22 = smov [#allocation3]  }
   0xb   :  { %26 = dma.vmem_to_smem %s24_s20, 16, %s183_s22, [#allocation4]  }
   0xc   :  { %181 = dma.done.wait [#allocation4], 16  }
   0xd   :  { %182 = vsyncadd [#allocation4], 4294967280 }
   0xe   :  { %32 = sfence }
   0xf   :  { %s34_s23 = sld [smem:[#allocation3]]  ;;  %s145_s24 = sld [smem:[#allocation3 + $0x1]]  ;;  %v33_v0 = vld [vmem:[%s259_s0] sm:$0xff]  ;;  %v144_v1 = vld [vmem:[%s259_s0 + $0x8] sm:$0xff]  ;;  %v146_v2 = vld [vmem:[%s259_s0 + $0x10] sm:$0xff]  ;;  %v92_v38 = vstv %s262_s3  ;;  %v113_v45 = vlaneseq }
  0x10   :  { %s147_s25 = sld [smem:[#allocation3 + $0x2]]  ;;  %s149_s26 = sld [smem:[#allocation3 + $0x3]]  ;;  %v148_v5 = vld [vmem:[%s259_s0 + $0x18] sm:$0xff]  ;;  %v150_v11 = vld [vmem:[%s259_s0 + $0x20] sm:$0xff]  ;;  %v152_v15 = vld [vmem:[%s259_s0 + $0x28] sm:$0xff] }
  0x11   :  { %s151_s27 = sld [smem:[#allocation3 + $0x4]]  ;;  %s153_s28 = sld [smem:[#allocation3 + $0x5]]  ;;  %v154_v19 = vld [vmem:[%s259_s0 + $0x30] sm:$0xff]  ;;  %v156_v23 = vld [vmem:[%s259_s0 + $0x38] sm:$0xff]  ;;  %v158_v27 = vld [vmem:[%s259_s0 + $0x40] sm:$0xff]  ;;  %v114_v48 = vshrl.u32 %v113_v45, 7 }
  0x12   :  { %s155_s7 = sld [smem:[#allocation3 + $0x6]]  ;;  %s157_s12 = sld [smem:[#allocation3 + $0x7]]  ;;  %v160_v31 = vld [vmem:[%s259_s0 + $0x48] sm:$0xff]  ;;  %v95_v49 = vld [vmem:[%s260_s1] sm:$0xff]  ;;  %v116_v51 = vand.u32 127, %v113_v45 }
  0x13   :  { %s159_s15 = sld [smem:[#allocation3 + $0x8]]  ;;  %s161_s18 = sld [smem:[#allocation3 + $0x9]]  ;;  %v117_v52 = vmul.u32 128, %v114_v48 }
  0x15   :  { %v35_v3 = vstv %s34_s23  ;;  %v40_v4 = vstv %s145_s24  ;;  %v121_v57 = vadd.s32 %v117_v52, %v116_v51 }
  0x16   :  { %v36_v6 = vmul.f32 %v35_v3, %v33_v0  ;;  %v41_v7 = vmul.f32 %v144_v1, %v40_v4  ;;  %v46_v8 = vstv %s147_s25  ;;  %v52_v9 = vstv %s149_s26 }
  0x17   :  { %v47_v10 = vmul.f32 %v146_v2, %v46_v8  ;;  %v58_v12 = vstv %s151_s27  ;;  %v53_v14 = vmul.f32 %v148_v5, %v52_v9  ;;  %v64_v16 = vstv %s153_s28 }
  0x18   :  { %v42_v13 = vadd.f32 %v41_v7, %v36_v6  ;;  %v59_v18 = vmul.f32 %v150_v11, %v58_v12  ;;  %v70_v20 = vstv %s155_s7  ;;  %v65_v22 = vmul.f32 %v152_v15, %v64_v16 }
  0x19   :  { %v76_v24 = vstv %s157_s12  ;;  %v71_v26 = vmul.f32 %v154_v19, %v70_v20  ;;  %v82_v28 = vstv %s159_s15  ;;  %v88_v32 = vstv %s161_s18 }
  0x1a   :  { %v48_v17 = vadd.f32 %v47_v10, %v42_v13  ;;  %v77_v30 = vmul.f32 %v156_v23, %v76_v24  ;;  %v83_v34 = vmul.f32 %v158_v27, %v82_v28  ;;  %v89_v36 = vmul.f32 %v160_v31, %v88_v32 }
  0x1b   :  { %vm122_vm1 = vcmp.lt.s32.totalorder %v121_v57, 8 }
  0x1c   :  { %v54_v21 = vadd.f32 %v53_v14, %v48_v17 }
  0x1e   :  { %v60_v25 = vadd.f32 %v59_v18, %v54_v21 }
  0x20   :  { %v66_v29 = vadd.f32 %v65_v22, %v60_v25 }
  0x22   :  { %v72_v33 = vadd.f32 %v71_v26, %v66_v29 }
  0x24   :  { %v78_v35 = vadd.f32 %v77_v30, %v72_v33 }
  0x26   :  { %v84_v37 = vadd.f32 %v83_v34, %v78_v35 }
  0x28   :  { %v90_v39 = vadd.f32 %v89_v36, %v84_v37 }
  0x2a   :  { %v93_v40 = vadd.f32 %v92_v38, %v90_v39 }
  0x2c   :  { %94 = vst [vmem:[%s263_s4] sm:$0xff] %v93_v40  ;;  %v99_v41 = vand.u32 2147483647, %v93_v40  ;;  %v96_v53 = vmax.f32 %v93_v40, 0.0  ;;  %v97_v54 = vmul.f32 %v95_v49, %v93_v40 }
  0x2e   :  { %v100_v42 = vsub.f32 0.0, %v99_v41  ;;  %v98_v59 = vsub.f32 %v96_v53, %v97_v54 }
  0x30   :  { %v101_v43 = vmul.f32 1.442695, %v100_v42 }
  0x32   :  { %165 = vpow2.f32 %v101_v43 }
  0x3c   :  { %v166_v44 = vpop.eup %165 }
  0x3d   :  { %v103_v46 = vadd.f32 1.0, %v166_v44  ;;  %v106_v47 = vmul.f32 -0.5, %v166_v44  ;;  %v109_v55 = vand.u32 2147483647, %v166_v44 }
  0x3f   :  { %167 = vlog2.f32 %v103_v46  ;;  %v107_v50 = vadd.f32 1.0, %v106_v47  ;;  %vm110_vm0 = vcmp.lt.f32.partialorder %v109_v55, 0.0004427343 }
  0x41   :  { %v108_v56 = vmul.f32 %v166_v44, %v107_v50 }
  0x49   :  { %v168_v58 = vpop.eup %167 }
  0x4a   :  { %v105_v60 = vmul.f32 0.6931472, %v168_v58 }
  0x4c   :  { %v111_v61 = vsel %vm110_vm0, %v108_v56, %v105_v60 }
  0x4d   :  { %v112_v62 = vadd.f32 %v111_v61, %v98_v59 }
  0x4f   :  { %v123_v63 = vsel %vm122_vm1, %v112_v62, 0.0 }
  0x50   :  { %124 = vadd.xlane.f32.xlu0 %v123_v63 }
  0xdd   :  { %v125_v0 = vpop.xlane.xlu0 %124 }
  0xde   :  { %v126_v1 = vrot.slane %v125_v0, 4 }
  0xe0   :  { %v127_v2 = vadd.f32 %v126_v1, %v125_v0 }
  0xe2   :  { %v128_v3 = vrot.slane %v127_v2, 2 }
  0xe4   :  { %v129_v4 = vadd.f32 %v128_v3, %v127_v2 }
  0xe6   :  { %v130_v5 = vrot.slane %v129_v4, 1 }
  0xe8   :  { %v131_v6 = vadd.f32 %v130_v5, %v129_v4 }
  0xea   :  { %162 = vpush %v131_v6 }
 0x11b   :  { %s163_s1 = spop %162 }
 0x11c   :  { %v133_v7 = vstv %s163_s1 }
 0x11d   :  { %134 = vst [vmem:[%s264_s5] sm:$0x1] %v133_v7 }
 0x11e   :  { %143 = vsyncpa [#allocation4], 1 }

</bundles_post_ra>
